<compile_context>
chip_gen: v7x
topology: tpu7x:2x2x1
jax: 0.10.0
libtpu: 0.0.40
codegen_flags: <defaults>
</compile_context>

<pallas_src>
import functools
import math

import jax
import jax.numpy as jnp
from jax import lax
from jax.experimental import pallas as pl
from jax.experimental.pallas import tpu as pltpu

EPS = 1e-6


def block_kernel(x_ref, gamma_ref, wqkv_ref, wc_ref, wgu_ref, wd_ref, o_ref,
                 *, n_head):
    # x_ref block: (1, T, C) f32 -- one batch element per grid step.
    x = x_ref[0]                      # (T, C) f32
    gamma = gamma_ref[...]            # (1, C) f32
    T, C = x.shape
    hs = C // n_head
    scale = 1.0 / math.sqrt(hs)

    def rmsnorm(h):
        # eps is added OUTSIDE the sqrt; exact divide for parity with PyTorch.
        ms = jnp.mean(h * h, axis=-1, keepdims=True)
        return gamma * h / (jnp.sqrt(ms) + EPS)

    # ---------------- attention branch ----------------
    xn = rmsnorm(x).astype(jnp.bfloat16)                               # (T, C) bf16
    qkv = jnp.dot(xn, wqkv_ref[...],
                  preferred_element_type=jnp.float32)                  # (T, 3C) f32
    qkv_bf = qkv.astype(jnp.bfloat16)

    row = lax.broadcasted_iota(jnp.int32, (T, T), 0)
    col = lax.broadcasted_iota(jnp.int32, (T, T), 1)
    causal = row >= col                                                # (T, T) bool

    # Statically unrolled per-head loop (n_head=4 here).
    # TODO(synk): at production n_head/T use lax.fori_loop + flash KV tiling.
    y_heads = []
    for h in range(n_head):
        q_h = qkv_bf[:, 0 * C + h * hs: 0 * C + (h + 1) * hs]          # (T, hs)
        k_h = qkv_bf[:, 1 * C + h * hs: 1 * C + (h + 1) * hs]          # (T, hs)
        v_h = qkv_bf[:, 2 * C + h * hs: 2 * C + (h + 1) * hs]          # (T, hs)

        # scores[q, k] = <q_h[q], k_h[k]> * scale  (contract hs, no transpose op)
        s = lax.dot_general(q_h, k_h, (((1,), (1,)), ((), ())),
                            preferred_element_type=jnp.float32) * scale
        s = jnp.where(causal, s, -1e30)

        m = jnp.max(s, axis=-1, keepdims=True)
        e = jnp.exp(s - m)
        p = e * pl.reciprocal(jnp.sum(e, axis=-1, keepdims=True), approx=True)

        y_heads.append(jnp.dot(p.astype(jnp.bfloat16), v_h,
                               preferred_element_type=jnp.float32))     # (T, hs) f32

    # Concatenate heads along lanes -> (T, C), then ONE dense output projection
    # with full contraction depth C (replaces n_head contraction-8 matmuls).
    y = jnp.concatenate(y_heads, axis=1).astype(jnp.bfloat16)           # (T, C) bf16
    attn_out = jnp.dot(y, wc_ref[...],
                       preferred_element_type=jnp.float32)              # (T, C) f32

    x1 = x + attn_out                                                   # residual 1

    # ---------------- MLP branch ----------------
    xn2 = rmsnorm(x1).astype(jnp.bfloat16)
    gu = jnp.dot(xn2, wgu_ref[...],
                 preferred_element_type=jnp.float32)                    # (T, 8C) f32
    gate = gu[:, :4 * C]
    up = gu[:, 4 * C:]
    hact = (jnp.maximum(gate, 0.0) * up).astype(jnp.bfloat16)           # (T, 4C) bf16
    mlp_out = jnp.dot(hact, wd_ref[...],
                      preferred_element_type=jnp.float32)               # (T, C) f32

    # C=32 < 128 -> single masked vst per step (negligible at this size);
    # production configs should use C >= 128 (unmasked, lane-dense store).
    o_ref[0] = (x1 + mlp_out).astype(o_ref.dtype)                       # residual 2
    # Dropout layers are identity here (eval mode / p = 0.0).


def block_forward(x, params, n_head):
    """x: (B, T, C) f32; params = (gamma_f32, wqkv_bf16, wc_bf16, wgu_bf16, wd_bf16)."""
    B, T, C = x.shape
    gamma, wqkv, wc, wgu, wd = params

    def weight_spec(arr):
        # Grid-invariant weight: whole-array block, constant index map,
        # single-buffered (no double-buffering of a constant tile).
        return pl.BlockSpec(arr.shape, lambda b: (0,) * arr.ndim,
                            pipeline_mode=pl.Buffered(1))

    return pl.pallas_call(
        functools.partial(block_kernel, n_head=n_head),
        out_shape=jax.ShapeDtypeStruct((B, T, C), jnp.float32),
        grid_spec=pltpu.PrefetchScalarGridSpec(
            num_scalar_prefetch=0,
            grid=(B,),
            in_specs=[
                pl.BlockSpec((1, T, C), lambda b: (b, 0, 0)),   # x (per batch)
                weight_spec(gamma),                             # RMSNorm weight (f32)
                weight_spec(wqkv),                              # qkv proj (bf16)
                weight_spec(wc),                                # attn out proj (bf16)
                weight_spec(wgu),                               # fused gate+up (bf16)
                weight_spec(wd),                                # mlp down (bf16)
            ],
            out_specs=pl.BlockSpec((1, T, C), lambda b: (b, 0, 0)),
        ),
        compiler_params=pltpu.CompilerParams(
            dimension_semantics=("parallel",),
            vmem_limit_bytes=8 * 1024 * 1024,
        ),
    )(x, gamma, wqkv, wc, wgu, wd)


def block_reference(x, gamma, wqkv, wc, wg, wu, wd, n_head):
    """Pure-JAX f32 reference mirroring the PyTorch module semantics."""
    B, T, C = x.shape
    hs = C // n_head

    def rms(h):
        ms = jnp.mean(h * h, axis=-1, keepdims=True)
        return gamma[0] * h / (jnp.sqrt(ms) + EPS)

    xn = rms(x)
    qkv = xn @ wqkv
    q, k, v = jnp.split(qkv, 3, axis=-1)
    q = q.reshape(B, T, n_head, hs).transpose(0, 2, 1, 3)
    k = k.reshape(B, T, n_head, hs).transpose(0, 2, 1, 3)
    v = v.reshape(B, T, n_head, hs).transpose(0, 2, 1, 3)
    scores = jnp.einsum('bhqd,bhkd->bhqk', q, k) / math.sqrt(hs)
    mask = jnp.tril(jnp.ones((T, T), dtype=bool))
    scores = jnp.where(mask[None, None], scores, -jnp.inf)
    p = jax.nn.softmax(scores, axis=-1)
    y = jnp.einsum('bhqk,bhkd->bhqd', p, v).transpose(0, 2, 1, 3).reshape(B, T, C)
    x1 = x + y @ wc

    xn2 = rms(x1)
    h = jax.nn.relu(xn2 @ wg) * (xn2 @ wu)
    return x1 + h @ wd


if __name__ == "__main__":
    # args: n_embed=32, n_head=4, bias=False, dropout=0.0
    B, T, C, H = 2, 8, 32, 4

    key = jax.random.PRNGKey(0)
    keys = jax.random.split(key, 7)
    scale = 0.02
    x = jax.random.normal(keys[0], (B, T, C), dtype=jnp.float32)

    gamma = jnp.ones((1, C), dtype=jnp.float32)                        # RMSNorm weight
    # Weights stored as bf16 (halved HBM/VMEM traffic); built from f32 draws.
    wqkv = (scale * jax.random.normal(keys[1], (C, 3 * C), jnp.float32)).astype(jnp.bfloat16)
    wc = (scale * jax.random.normal(keys[2], (C, C), jnp.float32)).astype(jnp.bfloat16)
    wg = (scale * jax.random.normal(keys[3], (C, 4 * C), jnp.float32)).astype(jnp.bfloat16)
    wu = (scale * jax.random.normal(keys[4], (C, 4 * C), jnp.float32)).astype(jnp.bfloat16)
    wd = (scale * jax.random.normal(keys[5], (4 * C, C), jnp.float32)).astype(jnp.bfloat16)
    wgu = jnp.concatenate([wg, wu], axis=1)                            # fused (C, 8C)

    params = (gamma, wqkv, wc, wgu, wd)

    out = block_forward(x, params, n_head=H)
    out = jax.block_until_ready(out)

    ref = block_reference(
        x, gamma,
        wqkv.astype(jnp.float32), wc.astype(jnp.float32),
        wg.astype(jnp.float32), wu.astype(jnp.float32), wd.astype(jnp.float32),
        n_head=H)

    assert out.shape == (B, T, C)
    assert jnp.allclose(out, ref, atol=5e-3, rtol=5e-3), (
        float(jnp.max(jnp.abs(out - ref))))

    print("KERNEL_OK")
</pallas_src>

<mosaic_0001>
module attributes {stable_mosaic.version = 11 : i64} {
  func.func @block_kernel(%arg0: i32, %arg1: memref<1x8x32xf32, #tpu.memory_space<vmem>>, %arg2: memref<1x32xf32, #tpu.memory_space<vmem>>, %arg3: memref<32x96xbf16, #tpu.memory_space<vmem>>, %arg4: memref<32x32xbf16, #tpu.memory_space<vmem>>, %arg5: memref<32x256xbf16, #tpu.memory_space<vmem>>, %arg6: memref<128x32xbf16, #tpu.memory_space<vmem>>, %arg7: memref<1x8x32xf32, #tpu.memory_space<vmem>>) attributes {dimension_semantics = [#tpu.dimension_semantics<parallel>], iteration_bounds = array<i64: 2>, scalar_prefetch = 0 : i64, scratch_operands = 0 : i64, tpu.core_type = #tpu.core_type<tc>, window_params = [{transform_indices = @transform_0, window_bounds = array<i64: 1, 8, 32>}, {pipeline_mode = #tpu.pipeline_mode<synchronous>, transform_indices = @transform_1, window_bounds = array<i64: 1, 32>}, {pipeline_mode = #tpu.pipeline_mode<synchronous>, transform_indices = @transform_2, window_bounds = array<i64: 32, 96>}, {pipeline_mode = #tpu.pipeline_mode<synchronous>, transform_indices = @transform_3, window_bounds = array<i64: 32, 32>}, {pipeline_mode = #tpu.pipeline_mode<synchronous>, transform_indices = @transform_4, window_bounds = array<i64: 32, 256>}, {pipeline_mode = #tpu.pipeline_mode<synchronous>, transform_indices = @transform_5, window_bounds = array<i64: 128, 32>}, {transform_indices = @transform_6, window_bounds = array<i64: 1, 8, 32>}]} {
    %c0 = arith.constant 0 : index
    %c0_0 = arith.constant 0 : index
    %c0_1 = arith.constant 0 : index
    %0 = vector.load %arg1[%c0, %c0_0, %c0_1] : memref<1x8x32xf32, #tpu.memory_space<vmem>>, vector<1x8x32xf32>
    %1 = vector.shape_cast %0 : vector<1x8x32xf32> to vector<8x32xf32>
    %c0_2 = arith.constant 0 : index
    %c0_3 = arith.constant 0 : index
    %2 = vector.load %arg2[%c0_2, %c0_3] : memref<1x32xf32, #tpu.memory_space<vmem>>, vector<1x32xf32>
    %3 = arith.mulf %1, %1 : vector<8x32xf32>
    %cst = arith.constant dense<0.000000e+00> : vector<8xf32>
    %4 = vector.multi_reduction <add>, %3, %cst [1] : vector<8x32xf32> to vector<8xf32>
    %5 = vector.shape_cast %4 : vector<8xf32> to vector<8x1xf32>
    %cst_4 = arith.constant 3.200000e+01 : f32
    %6 = vector.broadcast %cst_4 : f32 to vector<8x1xf32>
    %7 = arith.divf %5, %6 : vector<8x1xf32>
    %8 = vector.broadcast %2 : vector<1x32xf32> to vector<8x32xf32>
    %9 = arith.mulf %8, %1 : vector<8x32xf32>
    %10 = math.sqrt %7 : vector<8x1xf32>
    %cst_5 = arith.constant 9.99999997E-7 : f32
    %11 = vector.broadcast %cst_5 : f32 to vector<8x1xf32>
    %12 = arith.addf %10, %11 : vector<8x1xf32>
    %13 = vector.broadcast %12 : vector<8x1xf32> to vector<8x32xf32>
    %14 = arith.divf %9, %13 : vector<8x32xf32>
    %15 = arith.truncf %14 : vector<8x32xf32> to vector<8x32xbf16>
    %c0_6 = arith.constant 0 : index
    %c0_7 = arith.constant 0 : index
    %16 = vector.load %arg3[%c0_6, %c0_7] : memref<32x96xbf16, #tpu.memory_space<vmem>>, vector<32x96xbf16>
    %cst_8 = arith.constant dense<0.000000e+00> : vector<8x96xf32>
    %17 = tpu.matmul %15, %16, %cst_8 {dimension_numbers = #tpu.dot_dimension_numbers<[1], [0], [0], [1], [0, 0, 1, 1], [], []>} : vector<8x32xbf16>, vector<32x96xbf16>, vector<8x96xf32> -> vector<8x96xf32>
    %18 = arith.truncf %17 : vector<8x96xf32> to vector<8x96xbf16>
    %19 = tpu.iota {dimensions = array<i32: 0>} : vector<8x8xi32>
    %20 = tpu.iota {dimensions = array<i32: 1>} : vector<8x8xi32>
    %21 = arith.cmpi sge, %19, %20 : vector<8x8xi32>
    %22 = vector.extract_strided_slice %18 {offsets = [0, 0], sizes = [8, 8], strides = [1, 1]} : vector<8x96xbf16> to vector<8x8xbf16>
    %23 = vector.extract_strided_slice %18 {offsets = [0, 32], sizes = [8, 8], strides = [1, 1]} : vector<8x96xbf16> to vector<8x8xbf16>
    %24 = vector.extract_strided_slice %18 {offsets = [0, 64], sizes = [8, 8], strides = [1, 1]} : vector<8x96xbf16> to vector<8x8xbf16>
    %cst_9 = arith.constant dense<0.000000e+00> : vector<8x8xf32>
    %25 = tpu.matmul %22, %23, %cst_9 {dimension_numbers = #tpu.dot_dimension_numbers<[1], [1], [0], [0], [0, 0, 1, 0], [], []>} : vector<8x8xbf16>, vector<8x8xbf16>, vector<8x8xf32> -> vector<8x8xf32>
    %cst_10 = arith.constant 0.353553385 : f32
    %26 = vector.broadcast %cst_10 : f32 to vector<8x8xf32>
    %27 = arith.mulf %25, %26 : vector<8x8xf32>
    %cst_11 = arith.constant -1.000000e+30 : f32
    %28 = vector.broadcast %cst_11 : f32 to vector<8x8xf32>
    %29 = arith.select %21, %27, %28 : vector<8x8xi1>, vector<8x8xf32>
    %cst_12 = arith.constant dense<0xFF800000> : vector<8xf32>
    %30 = vector.multi_reduction <maximumf>, %29, %cst_12 [1] : vector<8x8xf32> to vector<8xf32>
    %31 = vector.shape_cast %30 : vector<8xf32> to vector<8x1xf32>
    %32 = vector.broadcast %31 : vector<8x1xf32> to vector<8x8xf32>
    %33 = arith.subf %29, %32 : vector<8x8xf32>
    %34 = math.exp %33 : vector<8x8xf32>
    %cst_13 = arith.constant dense<0.000000e+00> : vector<8xf32>
    %35 = vector.multi_reduction <add>, %34, %cst_13 [1] : vector<8x8xf32> to vector<8xf32>
    %36 = vector.shape_cast %35 : vector<8xf32> to vector<8x1xf32>
    %37 = tpu.reciprocal %36 {approx = true} : vector<8x1xf32> -> vector<8x1xf32>
    %38 = vector.broadcast %37 : vector<8x1xf32> to vector<8x8xf32>
    %39 = arith.mulf %34, %38 : vector<8x8xf32>
    %40 = arith.truncf %39 : vector<8x8xf32> to vector<8x8xbf16>
    %cst_14 = arith.constant dense<0.000000e+00> : vector<8x8xf32>
    %41 = tpu.matmul %40, %24, %cst_14 {dimension_numbers = #tpu.dot_dimension_numbers<[1], [0], [0], [1], [0, 0, 1, 1], [], []>} : vector<8x8xbf16>, vector<8x8xbf16>, vector<8x8xf32> -> vector<8x8xf32>
    %42 = vector.extract_strided_slice %18 {offsets = [0, 8], sizes = [8, 8], strides = [1, 1]} : vector<8x96xbf16> to vector<8x8xbf16>
    %43 = vector.extract_strided_slice %18 {offsets = [0, 40], sizes = [8, 8], strides = [1, 1]} : vector<8x96xbf16> to vector<8x8xbf16>
    %44 = vector.extract_strided_slice %18 {offsets = [0, 72], sizes = [8, 8], strides = [1, 1]} : vector<8x96xbf16> to vector<8x8xbf16>
    %cst_15 = arith.constant dense<0.000000e+00> : vector<8x8xf32>
    %45 = tpu.matmul %42, %43, %cst_15 {dimension_numbers = #tpu.dot_dimension_numbers<[1], [1], [0], [0], [0, 0, 1, 0], [], []>} : vector<8x8xbf16>, vector<8x8xbf16>, vector<8x8xf32> -> vector<8x8xf32>
    %cst_16 = arith.constant 0.353553385 : f32
    %46 = vector.broadcast %cst_16 : f32 to vector<8x8xf32>
    %47 = arith.mulf %45, %46 : vector<8x8xf32>
    %cst_17 = arith.constant -1.000000e+30 : f32
    %48 = vector.broadcast %cst_17 : f32 to vector<8x8xf32>
    %49 = arith.select %21, %47, %48 : vector<8x8xi1>, vector<8x8xf32>
    %cst_18 = arith.constant dense<0xFF800000> : vector<8xf32>
    %50 = vector.multi_reduction <maximumf>, %49, %cst_18 [1] : vector<8x8xf32> to vector<8xf32>
    %51 = vector.shape_cast %50 : vector<8xf32> to vector<8x1xf32>
    %52 = vector.broadcast %51 : vector<8x1xf32> to vector<8x8xf32>
    %53 = arith.subf %49, %52 : vector<8x8xf32>
    %54 = math.exp %53 : vector<8x8xf32>
    %cst_19 = arith.constant dense<0.000000e+00> : vector<8xf32>
    %55 = vector.multi_reduction <add>, %54, %cst_19 [1] : vector<8x8xf32> to vector<8xf32>
    %56 = vector.shape_cast %55 : vector<8xf32> to vector<8x1xf32>
    %57 = tpu.reciprocal %56 {approx = true} : vector<8x1xf32> -> vector<8x1xf32>
    %58 = vector.broadcast %57 : vector<8x1xf32> to vector<8x8xf32>
    %59 = arith.mulf %54, %58 : vector<8x8xf32>
    %60 = arith.truncf %59 : vector<8x8xf32> to vector<8x8xbf16>
    %cst_20 = arith.constant dense<0.000000e+00> : vector<8x8xf32>
    %61 = tpu.matmul %60, %44, %cst_20 {dimension_numbers = #tpu.dot_dimension_numbers<[1], [0], [0], [1], [0, 0, 1, 1], [], []>} : vector<8x8xbf16>, vector<8x8xbf16>, vector<8x8xf32> -> vector<8x8xf32>
    %62 = vector.extract_strided_slice %18 {offsets = [0, 16], sizes = [8, 8], strides = [1, 1]} : vector<8x96xbf16> to vector<8x8xbf16>
    %63 = vector.extract_strided_slice %18 {offsets = [0, 48], sizes = [8, 8], strides = [1, 1]} : vector<8x96xbf16> to vector<8x8xbf16>
    %64 = vector.extract_strided_slice %18 {offsets = [0, 80], sizes = [8, 8], strides = [1, 1]} : vector<8x96xbf16> to vector<8x8xbf16>
    %cst_21 = arith.constant dense<0.000000e+00> : vector<8x8xf32>
    %65 = tpu.matmul %62, %63, %cst_21 {dimension_numbers = #tpu.dot_dimension_numbers<[1], [1], [0], [0], [0, 0, 1, 0], [], []>} : vector<8x8xbf16>, vector<8x8xbf16>, vector<8x8xf32> -> vector<8x8xf32>
    %cst_22 = arith.constant 0.353553385 : f32
    %66 = vector.broadcast %cst_22 : f32 to vector<8x8xf32>
    %67 = arith.mulf %65, %66 : vector<8x8xf32>
    %cst_23 = arith.constant -1.000000e+30 : f32
    %68 = vector.broadcast %cst_23 : f32 to vector<8x8xf32>
    %69 = arith.select %21, %67, %68 : vector<8x8xi1>, vector<8x8xf32>
    %cst_24 = arith.constant dense<0xFF800000> : vector<8xf32>
    %70 = vector.multi_reduction <maximumf>, %69, %cst_24 [1] : vector<8x8xf32> to vector<8xf32>
    %71 = vector.shape_cast %70 : vector<8xf32> to vector<8x1xf32>
    %72 = vector.broadcast %71 : vector<8x1xf32> to vector<8x8xf32>
    %73 = arith.subf %69, %72 : vector<8x8xf32>
    %74 = math.exp %73 : vector<8x8xf32>
    %cst_25 = arith.constant dense<0.000000e+00> : vector<8xf32>
    %75 = vector.multi_reduction <add>, %74, %cst_25 [1] : vector<8x8xf32> to vector<8xf32>
    %76 = vector.shape_cast %75 : vector<8xf32> to vector<8x1xf32>
    %77 = tpu.reciprocal %76 {approx = true} : vector<8x1xf32> -> vector<8x1xf32>
    %78 = vector.broadcast %77 : vector<8x1xf32> to vector<8x8xf32>
    %79 = arith.mulf %74, %78 : vector<8x8xf32>
    %80 = arith.truncf %79 : vector<8x8xf32> to vector<8x8xbf16>
    %cst_26 = arith.constant dense<0.000000e+00> : vector<8x8xf32>
    %81 = tpu.matmul %80, %64, %cst_26 {dimension_numbers = #tpu.dot_dimension_numbers<[1], [0], [0], [1], [0, 0, 1, 1], [], []>} : vector<8x8xbf16>, vector<8x8xbf16>, vector<8x8xf32> -> vector<8x8xf32>
    %82 = vector.extract_strided_slice %18 {offsets = [0, 24], sizes = [8, 8], strides = [1, 1]} : vector<8x96xbf16> to vector<8x8xbf16>
    %83 = vector.extract_strided_slice %18 {offsets = [0, 56], sizes = [8, 8], strides = [1, 1]} : vector<8x96xbf16> to vector<8x8xbf16>
    %84 = vector.extract_strided_slice %18 {offsets = [0, 88], sizes = [8, 8], strides = [1, 1]} : vector<8x96xbf16> to vector<8x8xbf16>
    %cst_27 = arith.constant dense<0.000000e+00> : vector<8x8xf32>
    %85 = tpu.matmul %82, %83, %cst_27 {dimension_numbers = #tpu.dot_dimension_numbers<[1], [1], [0], [0], [0, 0, 1, 0], [], []>} : vector<8x8xbf16>, vector<8x8xbf16>, vector<8x8xf32> -> vector<8x8xf32>
    %cst_28 = arith.constant 0.353553385 : f32
    %86 = vector.broadcast %cst_28 : f32 to vector<8x8xf32>
    %87 = arith.mulf %85, %86 : vector<8x8xf32>
    %cst_29 = arith.constant -1.000000e+30 : f32
    %88 = vector.broadcast %cst_29 : f32 to vector<8x8xf32>
    %89 = arith.select %21, %87, %88 : vector<8x8xi1>, vector<8x8xf32>
    %cst_30 = arith.constant dense<0xFF800000> : vector<8xf32>
    %90 = vector.multi_reduction <maximumf>, %89, %cst_30 [1] : vector<8x8xf32> to vector<8xf32>
    %91 = vector.shape_cast %90 : vector<8xf32> to vector<8x1xf32>
    %92 = vector.broadcast %91 : vector<8x1xf32> to vector<8x8xf32>
    %93 = arith.subf %89, %92 : vector<8x8xf32>
    %94 = math.exp %93 : vector<8x8xf32>
    %cst_31 = arith.constant dense<0.000000e+00> : vector<8xf32>
    %95 = vector.multi_reduction <add>, %94, %cst_31 [1] : vector<8x8xf32> to vector<8xf32>
    %96 = vector.shape_cast %95 : vector<8xf32> to vector<8x1xf32>
    %97 = tpu.reciprocal %96 {approx = true} : vector<8x1xf32> -> vector<8x1xf32>
    %98 = vector.broadcast %97 : vector<8x1xf32> to vector<8x8xf32>
    %99 = arith.mulf %94, %98 : vector<8x8xf32>
    %100 = arith.truncf %99 : vector<8x8xf32> to vector<8x8xbf16>
    %cst_32 = arith.constant dense<0.000000e+00> : vector<8x8xf32>
    %101 = tpu.matmul %100, %84, %cst_32 {dimension_numbers = #tpu.dot_dimension_numbers<[1], [0], [0], [1], [0, 0, 1, 1], [], []>} : vector<8x8xbf16>, vector<8x8xbf16>, vector<8x8xf32> -> vector<8x8xf32>
    %102 = tpu.concatenate %41, %61, %81, %101 in 1 : vector<8x8xf32>, vector<8x8xf32>, vector<8x8xf32>, vector<8x8xf32> -> vector<8x32xf32>
    %103 = arith.truncf %102 : vector<8x32xf32> to vector<8x32xbf16>
    %c0_33 = arith.constant 0 : index
    %c0_34 = arith.constant 0 : index
    %104 = vector.load %arg4[%c0_33, %c0_34] : memref<32x32xbf16, #tpu.memory_space<vmem>>, vector<32x32xbf16>
    %cst_35 = arith.constant dense<0.000000e+00> : vector<8x32xf32>
    %105 = tpu.matmul %103, %104, %cst_35 {dimension_numbers = #tpu.dot_dimension_numbers<[1], [0], [0], [1], [0, 0, 1, 1], [], []>} : vector<8x32xbf16>, vector<32x32xbf16>, vector<8x32xf32> -> vector<8x32xf32>
    %106 = arith.addf %1, %105 : vector<8x32xf32>
    %107 = arith.mulf %106, %106 : vector<8x32xf32>
    %cst_36 = arith.constant dense<0.000000e+00> : vector<8xf32>
    %108 = vector.multi_reduction <add>, %107, %cst_36 [1] : vector<8x32xf32> to vector<8xf32>
    %109 = vector.shape_cast %108 : vector<8xf32> to vector<8x1xf32>
    %cst_37 = arith.constant 3.200000e+01 : f32
    %110 = vector.broadcast %cst_37 : f32 to vector<8x1xf32>
    %111 = arith.divf %109, %110 : vector<8x1xf32>
    %112 = vector.broadcast %2 : vector<1x32xf32> to vector<8x32xf32>
    %113 = arith.mulf %112, %106 : vector<8x32xf32>
    %114 = math.sqrt %111 : vector<8x1xf32>
    %cst_38 = arith.constant 9.99999997E-7 : f32
    %115 = vector.broadcast %cst_38 : f32 to vector<8x1xf32>
    %116 = arith.addf %114, %115 : vector<8x1xf32>
    %117 = vector.broadcast %116 : vector<8x1xf32> to vector<8x32xf32>
    %118 = arith.divf %113, %117 : vector<8x32xf32>
    %119 = arith.truncf %118 : vector<8x32xf32> to vector<8x32xbf16>
    %c0_39 = arith.constant 0 : index
    %c0_40 = arith.constant 0 : index
    %120 = vector.load %arg5[%c0_39, %c0_40] : memref<32x256xbf16, #tpu.memory_space<vmem>>, vector<32x256xbf16>
    %cst_41 = arith.constant dense<0.000000e+00> : vector<8x256xf32>
    %121 = tpu.matmul %119, %120, %cst_41 {dimension_numbers = #tpu.dot_dimension_numbers<[1], [0], [0], [1], [0, 0, 1, 1], [], []>} : vector<8x32xbf16>, vector<32x256xbf16>, vector<8x256xf32> -> vector<8x256xf32>
    %122 = vector.extract_strided_slice %121 {offsets = [0, 0], sizes = [8, 128], strides = [1, 1]} : vector<8x256xf32> to vector<8x128xf32>
    %123 = vector.extract_strided_slice %121 {offsets = [0, 128], sizes = [8, 128], strides = [1, 1]} : vector<8x256xf32> to vector<8x128xf32>
    %cst_42 = arith.constant 0.000000e+00 : f32
    %124 = vector.broadcast %cst_42 : f32 to vector<8x128xf32>
    %125 = arith.maximumf %122, %124 : vector<8x128xf32>
    %126 = arith.mulf %125, %123 : vector<8x128xf32>
    %127 = arith.truncf %126 : vector<8x128xf32> to vector<8x128xbf16>
    %c0_43 = arith.constant 0 : index
    %c0_44 = arith.constant 0 : index
    %128 = vector.load %arg6[%c0_43, %c0_44] : memref<128x32xbf16, #tpu.memory_space<vmem>>, vector<128x32xbf16>
    %cst_45 = arith.constant dense<0.000000e+00> : vector<8x32xf32>
    %129 = tpu.matmul %127, %128, %cst_45 {dimension_numbers = #tpu.dot_dimension_numbers<[1], [0], [0], [1], [0, 0, 1, 1], [], []>} : vector<8x128xbf16>, vector<128x32xbf16>, vector<8x32xf32> -> vector<8x32xf32>
    %130 = arith.addf %106, %129 : vector<8x32xf32>
    %c0_46 = arith.constant 0 : index
    %c0_47 = arith.constant 0 : index
    %c0_48 = arith.constant 0 : index
    %131 = vector.load %arg7[%c0_46, %c0_47, %c0_48] : memref<1x8x32xf32, #tpu.memory_space<vmem>>, vector<1x8x32xf32>
    %132 = vector.shape_cast %131 : vector<1x8x32xf32> to vector<8x32xf32>
    %133 = vector.shape_cast %130 : vector<8x32xf32> to vector<1x8x32xf32>
    tpu.vector_store %arg7[%c0_46, %c0_47, %c0_48], %133 {strides = array<i32>} : memref<1x8x32xf32, #tpu.memory_space<vmem>>, vector<1x8x32xf32>,
    return
  }
  func.func @transform_0(%arg0: i32) -> (i32, i32, i32) {
    %c0_i32 = arith.constant 0 : i32
    %c0_i32_0 = arith.constant 0 : i32
    %c0_i32_1 = arith.constant 0 : i32
    return %arg0, %c0_i32, %c0_i32_0 : i32, i32, i32
  }
  func.func @transform_1(%arg0: i32) -> (i32, i32) {
    %c0_i32 = arith.constant 0 : i32
    %c0_i32_0 = arith.constant 0 : i32
    %c0_i32_1 = arith.constant 0 : i32
    return %c0_i32, %c0_i32_0 : i32, i32
  }
  func.func @transform_2(%arg0: i32) -> (i32, i32) {
    %c0_i32 = arith.constant 0 : i32
    %c0_i32_0 = arith.constant 0 : i32
    %c0_i32_1 = arith.constant 0 : i32
    return %c0_i32, %c0_i32_0 : i32, i32
  }
  func.func @transform_3(%arg0: i32) -> (i32, i32) {
    %c0_i32 = arith.constant 0 : i32
    %c0_i32_0 = arith.constant 0 : i32
    %c0_i32_1 = arith.constant 0 : i32
    return %c0_i32, %c0_i32_0 : i32, i32
  }
  func.func @transform_4(%arg0: i32) -> (i32, i32) {
    %c0_i32 = arith.constant 0 : i32
    %c0_i32_0 = arith.constant 0 : i32
    %c0_i32_1 = arith.constant 0 : i32
    return %c0_i32, %c0_i32_0 : i32, i32
  }
  func.func @transform_5(%arg0: i32) -> (i32, i32) {
    %c0_i32 = arith.constant 0 : i32
    %c0_i32_0 = arith.constant 0 : i32
    %c0_i32_1 = arith.constant 0 : i32
    return %c0_i32, %c0_i32_0 : i32, i32
  }
  func.func @transform_6(%arg0: i32) -> (i32, i32, i32) {
    %c0_i32 = arith.constant 0 : i32
    %c0_i32_0 = arith.constant 0 : i32
    %c0_i32_1 = arith.constant 0 : i32
    return %arg0, %c0_i32, %c0_i32_0 : i32, i32, i32
  }
}

</mosaic_0001>

<bundles_post_ra>
// kernel: tpu_custom_call.1
= control target key start
LH: loop header
LB: loop body
LE: loop exit
PB: predicated region body
PF: predicated region fallthrough
CT: control target
= control target key end

     0   :  { %11 = vsyncpa [#allocation3], 0  ;;  %s1760_s0 = inlined_call_operand.vmem [shape: f32[2,8,32], index: 0, kind: input, shape index: {}]   ;;  %s1761_s1 = inlined_call_operand.vmem [shape: f32[1,32], index: 1, kind: input, shape index: {}]   ;;  %s1762_s2 = inlined_call_operand.vmem [shape: bf16[32,96], index: 2, kind: input, shape index: {}]   ;;  %s1763_s3 = inlined_call_operand.vmem [shape: bf16[32,32], index: 3, kind: input, shape index: {}]   ;;  %s1764_s4 = inlined_call_operand.vmem [shape: bf16[32,256], index: 4, kind: input, shape index: {}]   ;;  %s1765_s5 = inlined_call_operand.vmem [shape: bf16[128,32], index: 5, kind: input, shape index: {}]   ;;  %s1766_s6 = inlined_call_operand.hbm [shape: f32[2,8,32], index: 6, kind: output, shape index: {}]  }
   0x1   :  { %13 = vsyncpa [#allocation3 + $0x1], 0  ;;  %s1502_s21 = smov 0   ;;  %s1504_s22 = smov 0  }
   0x2   :  { %s1506_s23 = smov 0   ;;  %s1508_s24 = smov 0  }
   0x3 LB: > { %s1523_s25 = sadd.s32 4294967295, %s1447_s24   ;;  %s1134_s26 = sadd.s32 4294967294, %s1447_s24   ;;  %s1447_s24 = sphi %s1508_s24, %s1772_s24   ;;  %s1443_s23 = sphi %s1506_s23, %s1771_s23   ;;  %s1439_s22 = sphi %s1504_s22, %s1770_s22   ;;  %s1435_s21 = sphi %s1502_s21, %s1769_s21  }
   0x4   : > { %s1527_s27 = sadd.s32 1, %s1447_s24   ;;  %s157_s28 = sadd.s32 1, %s1443_s23 }
   0x5   : > { %s154_s29 = ssub.s32 %s1447_s24, %s1527_s27  ;;  %p167_p0 = scmp.ne.s32.totalorder %s1443_s23, %s1439_s22 }
   0x6   : > { %p155_p1 = scmp.eq.s32.totalorder %s154_s29, 0  ;;  %p168_p2 = scmp.eq.s32.totalorder %s1523_s25, 1 }
   0x7   : > { %p173_p3 = scmp.ne.s32.totalorder %s1439_s22, %s1435_s21  ;;  %p174_p4 = scmp.eq.s32.totalorder %s1134_s26, 1 }
   0x8   : > { %s1538_s30 = scalar_select %p155_p1, %s1443_s23, %s157_s28  }
   0x9   : > { %p1540_p5 = por %p168_p2, %p167_p0  ;;  %p1544_p6 = por %p174_p4, %p173_p3 }
   0xa   : > { %p1137_p7 = scmp.ge.s32.totalorder %s1447_s24, 1  ;;  %p214_p8 = scmp.lt.s32.totalorder %s1447_s24, 3 }
   0xc   : > { %p215_p9 = pnand %p1137_p7, %p214_p8 }
   0xd   : > { %p243_p10 = scmp.lt.s32.totalorder (!%p215_p9), %s1523_s25, 1  ;;  %vm251_vm0 = vcmask (!%p215_p9), 261120   ;;  %v1343_v3 = vld [vmem:[%s1762_s2] sm:$0xff] (!%p215_p9)   ;;  %v1449_v4 = vmov (!%p215_p9), 0.0   ;;  %vm1450_vm1 = vmmov (!%p215_p9), 0   ;;  %v1344_v5 = vld [vmem:[%s1762_s2 + $0x8] sm:$0xff] (!%p215_p9)   ;;  %v335_v35 = vlaneseq (!%p215_p9) }
   0xe   : > { %218 = sbr.rel (%p215_p9) target bundleno = 2296 (0x8f8), region = 44  ;;  %1203 = vmatprep.subr.bf16.mxu0 (!%p215_p9), %v1449_v4  ;;  %1207 = vmatprep.mubr.msk.bf16.mxu0 (!%p215_p9), %vm1450_vm1, %v1449_v4  ;;  %v1577_v14 = vld [vmem:[%s1761_s1] ss:$0 sm:$0xff] (!%p215_p9)  ;;  %s1451_s20 = smov (!%p215_p9), 88   ;;  %vm343_vm4 = vcmask (!%p215_p9), 64512   ;;  %vm409_vm6 = vcmask (!%p215_p9), 1043456  }
   0xf   : > { %1204 = vmatpush3.bf16.msra.mxu0 (!%p215_p9), %v1343_v3  ;;  %1223 = vmatprep.subr.bf16.mxu1 (!%p215_p9), %v1449_v4  ;;  %s1452_s26 = smov (!%p215_p9), 96   ;;  %s1453_s28 = smov (!%p215_p9), 120   ;;  %v336_v36 = vshrl.u32 (!%p215_p9), %v335_v35, 7  ;;  %v338_v37 = vand.u32 (!%p215_p9), 127, %v335_v35  ;;  %vm802_vm7 = vcmask (!%p215_p9), 130048   ;;  %vm804_vm8 = vcmask (!%p215_p9), 195584  }
  0x10   : > { %1205 = vmatprep.subr.bf16.mxu0 (!%p215_p9), %v1449_v4  ;;  %1225 = vmatprep.mubr.msk.bf16.mxu1 (!%p215_p9), %vm1450_vm1, %v1449_v4  ;;  %s1454_s29 = smov (!%p215_p9), 80   ;;  %s1457_s11 = smov (!%p215_p9), 104  }
  0x11   : > { %vm339_vm5 = vcmp.ge.s32.totalorder (!%p215_p9), %v336_v36, %v338_v37  ;;  %s1458_s12 = smov (!%p215_p9), 56   ;;  %s1460_s14 = smov (!%p215_p9), 40  }
  0x12   : > { %s1461_s15 = smov (!%p215_p9), 48   ;;  %s1462_s16 = smov (!%p215_p9), 8  }
  0x13   : > { %1206 = vmatpush3.bf16.msra.mxu0 (!%p215_p9), %v1344_v5  ;;  %s240_s17 = sand.u32 (!%p215_p9), 1, %s1439_s22   ;;  %s1169_s19 = sshll.u32 (!%p215_p9), %s1523_s25, 7 }
  0x14   : > { %1211 = vmatprep.subr.bf16.mxu0 (!%p215_p9), %v1449_v4  ;;  %s1138_s18 = sshll.u32 (!%p215_p9), %s240_s17, 3 }
  0x15   : > { %s244_s9 = scalar_select %p243_p10, %s1523_s25, 1 }
  0x16   : > { %s1062_s25 = scalar_lea.sflag [#allocation3], %s240_s17 }
  0x17   : > { %s1139_s10 = sshll.u32 %s244_s9, 3  ;;  %s1455_s9 = smov 112  }
  0x18   : > { %s246_s13 = scalar_lea.vmem %s1760_s0, %s1139_s10  ;;  %s1456_s10 = smov 72  }
  0x19   : > { %v1555_v0 = vld [vmem:[%s246_s13] sm:$0xff]  ;;  %s1459_s13 = smov 64  }
  0x1a   : > { %v250_v1 = vmul.f32 %v1555_v0, %v1555_v0  ;;  %v263_v15 = vmul.f32 %v1577_v14, %v1555_v0 }
  0x1c   : > { %v252_v2 = vsel %vm251_vm0, %v250_v1, 0.0 }
  0x1d   : > { %253 = vadd.xlane.f32.xlu0 %v252_v2 }
  0xaa   : > { %v254_v6 = vpop.xlane.xlu0 %253 }
  0xab   : > { %v256_v7 = vmul.f32 0.03125, %v254_v6 }
  0xad   : > { %1361 = vrsqrt.f32 %v256_v7  ;;  %vm266_vm2 = vcmp.eq.f32.partialorder %v256_v7, inf  ;;  %v269_v10 = vand.u32 2147483648, %v256_v7  ;;  %vm268_vm3 = vcmp.eq.f32.partialorder %v256_v7, 0.0 }
  0xb7   : > { %v1362_v8 = vpop.eup %1361 }
  0xb8   : > { %v265_v9 = vmul.f32 %v1362_v8, %v256_v7 }
  0xba   : > { %v267_v11 = vsel %vm266_vm2, %v256_v7, %v265_v9 }
  0xbb   : > { %v270_v12 = vsel %vm268_vm3, %v269_v10, %v267_v11 }
  0xbc   : > { %v271_v13 = vadd.f32 1e-06, %v270_v12 }
  0xbe   : > { %1363 = vrcp.f32 %v271_v13 }
  0xc8   : > { %v1364_v16 = vpop.eup %1363 }
  0xc9   : > { %v273_v17 = vmul.f32 %v1364_v16, %v263_v15 }
  0xcb   : > { %v274_v18 = vpack.c.bf16 %v273_v17, %v273_v17 }
  0xcd   : > { %1208 = vmatmul.mubr.msk.bf16.vlgmr.msra.gmra.mrb[0].mxu0 %vm251_vm0, %v274_v18 }
  0xce   : > { %1213 = vmatprep.mubr.msk.bf16.mxu0 %vm1450_vm1, %v1449_v4 }
 0x1a0   : > { %v328_v19 = vpop.f32.mrb[0].mxu0 }
 0x1a1   : > { %v1584_v20 = vpack.c.bf16 %v328_v19, %v328_v19  ;;  %v1209_v21 = vpop.f32.mrb[1].mxu0 }
 0x1a2   : > { %v331_v22 = vpop.f32.mrb[2].mxu0 }
 0x1a3   : > { %455 = vrot.lane.b32.xlu1 %v1584_v20, %s1451_s20  ;;  %341 = vrot.lane.b32.xlu0 %v1584_v20, %s1452_s26  ;;  %v1210_v23 = vpop.f32.mrb[3].mxu0  ;;  %s1463_s26 = smov 16   ;;  %s242_s20 = scalar_lea.vmem [#allocation2], %s1138_s18 }
 0x1a7   : > { %453 = vrot.lane.b32.xlu1 %v1584_v20, %s1453_s28  ;;  %s1464_s28 = smov 24  }
 0x1ab   : > { %567 = vrot.lane.b32.xlu1 %v1584_v20, %s1454_s29 }
 0x1af   : > { %565 = vrot.lane.b32.xlu1 %v1584_v20, %s1455_s9  ;;  %s1717_s9 = scalar_lea.hbm %s1766_s6, %s1169_s19 }
 0x1b3   : > { %679 = vrot.lane.b32.xlu1 %v1584_v20, %s1456_s10 }
 0x1b7   : > { %677 = vrot.lane.b32.xlu1 %v1584_v20, %s1457_s11  ;;  %s1466_s11 = smov [#allocation2]  }
 0x215   : > { %v456_v24 = vpop.permute.xlu1 %455  ;;  %v342_v25 = vpop.permute.xlu0 %341 }
 0x216   : > { %v348_v26 = vsel %vm343_vm4, %v342_v25, 0  ;;  %v461_v27 = vsel %vm343_vm4, %v456_v24, 0 }
 0x217   : > { %1212 = vmatpush3.bf16.xpose.msra.mxu0 %v348_v26  ;;  %1224 = vmatpush3.bf16.xpose.msra.mxu1 %v461_v27 }
 0x218   : > { %1235 = vmatprep.subr.bf16.mxu1 %v1449_v4  ;;  %1217 = vmatprep.subr.bf16.mxu0 %v1449_v4 }
 0x219   : > { %v454_v28 = vpop.permute.xlu1 %453 }
 0x21d   : > { %v568_v29 = vpop.permute.xlu1 %567 }
 0x21e   : > { %v573_v30 = vsel %vm343_vm4, %v568_v29, 0  ;;  %1214 = vmatmul.mubr.msk.bf16.vlgmr.msra.gmra.mrb[4].mxu0 %vm343_vm4, %v1584_v20  ;;  %1226 = vmatmul.mubr.msk.bf16.vlgmr.msra.gmra.mrb[0].mxu1 %vm343_vm4, %v454_v28 }
 0x21f   : > { %1236 = vmatpush3.bf16.xpose.msra.mxu1 %v573_v30  ;;  %1237 = vmatprep.mubr.msk.bf16.mxu1 %vm1450_vm1, %v1449_v4 }
 0x220   : > { %1247 = vmatprep.subr.bf16.mxu1 %v1449_v4  ;;  %1219 = vmatprep.mubr.msk.bf16.mxu0 %vm1450_vm1, %v1449_v4 }
 0x221   : > { %v566_v31 = vpop.permute.xlu1 %565 }
 0x225   : > { %v680_v32 = vpop.permute.xlu1 %679 }
 0x226   : > { %v685_v33 = vsel %vm343_vm4, %v680_v32, 0  ;;  %1238 = vmatmul.mubr.msk.bf16.vlgmr.msra.gmra.mrb[4].mxu1 %vm343_vm4, %v566_v31 }
 0x227   : > { %1248 = vmatpush3.bf16.xpose.msra.mxu1 %v685_v33  ;;  %1249 = vmatprep.mubr.msk.bf16.mxu1 %vm1450_vm1, %v1449_v4 }
 0x228   : > { %1259 = vmatprep.subr.bf16.mxu1 %v1449_v4 }
 0x229   : > { %v678_v34 = vpop.permute.xlu1 %677 }
 0x22e   : > { %1250 = vmatmul.mubr.msk.bf16.vlgmr.msra.gmra.mrb[8].mxu1 %vm343_vm4, %v678_v34 }
 0x22f   : > { %1263 = vmatprep.mubr.msk.bf16.mxu1 %vm1450_vm1, %v1449_v4 }
 0x2f1   : > { %v384_v38 = vpop.f32.mrb[4].mxu0  ;;  %v497_v39 = vpop.f32.mrb[0].mxu1 }
 0x2f2   : > { %v390_v40 = vmul.f32 0.35355338, %v384_v38  ;;  %v503_v41 = vmul.f32 0.35355338, %v497_v39  ;;  %v1215_v42 = vpop.f32.mrb[5].mxu0  ;;  %v1227_v43 = vpop.f32.mrb[1].mxu1 }
 0x2f3   : > { %v387_v44 = vpop.f32.mrb[6].mxu0  ;;  %v500_v45 = vpop.f32.mrb[2].mxu1 }
 0x2f4   : > { %v1216_v46 = vpop.f32.mrb[7].mxu0  ;;  %v1228_v47 = vpop.f32.mrb[3].mxu1  ;;  %v504_v48 = vsel %vm339_vm5, %v503_v41, -1e+30  ;;  %v391_v49 = vsel %vm339_vm5, %v390_v40, -1e+30 }
 0x2f5   : > { %v505_v50 = vsel %vm343_vm4, %v504_v48, -inf  ;;  %v392_v51 = vsel %vm343_vm4, %v391_v49, -inf }
 0x2f6   : > { %506 = vmax.xlane.f32.xlu0 %v505_v50  ;;  %393 = vmax.xlane.f32.xlu1 %v392_v51 }
 0x2f9   : > { %v609_v52 = vpop.f32.mrb[4].mxu1 }
 0x2fa   : > { %v615_v53 = vmul.f32 0.35355338, %v609_v52  ;;  %v1239_v54 = vpop.f32.mrb[5].mxu1 }
 0x2fb   : > { %v612_v55 = vpop.f32.mrb[6].mxu1 }
 0x2fc   : > { %v1240_v56 = vpop.f32.mrb[7].mxu1  ;;  %v616_v57 = vsel %vm339_vm5, %v615_v53, -1e+30 }
 0x2fd   : > { %v617_v58 = vsel %vm343_vm4, %v616_v57, -inf }
 0x2fe   : > { %618 = vmax.xlane.f32.xlu0 %v617_v58  ;;  %v1346_v58 = vld [vmem:[%s1763_s3 + $0x8] sm:$0xff]  }
 0x301   : > { %v721_v59 = vpop.f32.mrb[8].mxu1 }
 0x302   : > { %v727_v60 = vmul.f32 0.35355338, %v721_v59  ;;  %v1251_v61 = vpop.f32.mrb[9].mxu1 }
 0x303   : > { %v724_v62 = vpop.f32.mrb[10].mxu1 }
 0x304   : > { %v1252_v63 = vpop.f32.mrb[11].mxu1  ;;  %v728_v1 = vsel %vm339_vm5, %v727_v60, -1e+30 }
 0x305   : > { %v729_v2 = vsel %vm343_vm4, %v728_v1, -inf }
 0x306   : > { %730 = vmax.xlane.f32.xlu1 %v729_v2 }
 0x383   : > { %v507_v3 = vpop.xlane.xlu0 %506  ;;  %v394_v5 = vpop.xlane.xlu1 %393 }
 0x384   : > { %v508_v6 = vsub.f32 %v504_v48, %v507_v3  ;;  %v395_v7 = vsub.f32 %v391_v49, %v394_v5 }
 0x386   : > { %v509_v8 = vmul.f32 1.442695, %v508_v6  ;;  %v396_v9 = vmul.f32 1.442695, %v395_v7 }
 0x388   : > { %1365 = vpow2.f32 %v509_v8 }
 0x389   : > { %1367 = vpow2.f32 %v396_v9 }
 0x38b   : > { %v619_v10 = vpop.xlane.xlu0 %618 }
 0x38c   : > { %v620_v11 = vsub.f32 %v616_v57, %v619_v10  ;;  %v1345_v57 = vld [vmem:[%s1763_s3] sm:$0xff]  }
 0x38d   : > { %1260 = vmatpush3.bf16.msra.mxu1 %v1345_v57 }
 0x38e   : > { %v621_v12 = vmul.f32 1.442695, %v620_v11  ;;  %1261 = vmatprep.subr.bf16.mxu1 %v1449_v4 }
 0x390   : > { %1369 = vpow2.f32 %v621_v12 }
 0x391   : > { %1262 = vmatpush3.bf16.msra.mxu1 %v1346_v58 }
 0x392   : > { %v1366_v13 = vpop.eup %1365  ;;  %1267 = vmatprep.subr.bf16.mxu1 %v1449_v4 }
 0x393   : > { %v1368_v15 = vpop.eup %1367  ;;  %v511_v16 = vsel %vm343_vm4, %v1366_v13, 0.0  ;;  %v731_v21 = vpop.xlane.xlu1 %730 }
 0x394   : > { %512 = vadd.xlane.f32.xlu1 %v511_v16  ;;  %v398_v17 = vsel %vm343_vm4, %v1368_v15, 0.0  ;;  %v732_v22 = vsub.f32 %v728_v1, %v731_v21  ;;  %v1347_v21 = vld [vmem:[%s1764_s4] ss:$8 sps:$4 sm:$0xff]  }
 0x395   : > { %399 = vadd.xlane.f32.xlu0 %v398_v17 }
 0x396   : > { %v733_v23 = vmul.f32 1.442695, %v732_v22  ;;  %v1349_v22 = vld [vmem:[%s1764_s4 + $0x4] ss:$8 sps:$4 sm:$0xff]  }
 0x398   : > { %1371 = vpow2.f32 %v733_v23  ;;  %v1465_v23 = vmov 0  }
 0x39a   : > { %v1370_v18 = vpop.eup %1369 }
 0x39b   : > { %v623_v19 = vsel %vm343_vm4, %v1370_v18, 0.0 }
 0x39c   : > { %624 = vadd.xlane.f32.xlu0 %v623_v19 }
 0x3a2   : > { %v1372_v24 = vpop.eup %1371 }
 0x3a3   : > { %v735_v25 = vsel %vm343_vm4, %v1372_v24, 0.0 }
 0x3a5   : > { %517 = vrot.lane.b32.xlu1 %v1584_v20, %s1458_s12  ;;  %s1389_s12 = sshll.u32 %s1466_s11, 4  ;;  %s1390_s12 = int_to_ptr.vmem [resolvable:$false] %s1389_s12 }
 0x3b2   : > { %404 = vrot.lane.b32.xlu0 %v1584_v20, %s1459_s13  ;;  %s1391_s13 = scalar_lea.vmem %s1390_s12, 256 }
 0x3b6   : > { %741 = vrot.lane.b32.xlu0 %v1584_v20, %s1460_s14 }
 0x3c9   : > { %736 = vadd.xlane.f32.xlu1 %v735_v25  ;;  %v1353_v25 = vld [vmem:[%s1765_s5] sm:$0xff]  }
 0x3da   : > { %629 = vrot.lane.b32.xlu1 %v1584_v20, %s1461_s15 }
 0x421   : > { %v513_v27 = vpop.xlane.xlu1 %512 }
 0x422   : > { %v400_v26 = vpop.xlane.xlu0 %399 }
 0x423   : > { %1373 = vrcp.f32 %v400_v26  ;;  %v1354_v26 = vld [vmem:[%s1765_s5 + $0x8] sm:$0xff]  }
 0x424   : > { %1375 = vrcp.f32 %v513_v27  ;;  %v1355_v27 = vld [vmem:[%s1765_s5 + $0x10] sm:$0xff]  }
 0x425   : > { %v518_v33 = vpop.permute.xlu1 %517 }
 0x426   : > { %v523_v36 = vsel %vm409_vm6, %v518_v33, 0 }
 0x429   : > { %v625_v28 = vpop.xlane.xlu0 %624 }
 0x42a   : > { %1377 = vrcp.f32 %v625_v28  ;;  %v1356_v28 = vld [vmem:[%s1765_s5 + $0x18] sm:$0xff]  }
 0x42d   : > { %v1374_v29 = vpop.eup %1373  ;;  %v405_v30 = vpop.permute.xlu0 %404 }
 0x42e   : > { %v402_v31 = vmul.f32 %v1374_v29, %v1368_v15  ;;  %v411_v32 = vsel %vm409_vm6, %v405_v30, 0  ;;  %v1376_v35 = vpop.eup %1375  ;;  %v1357_v29 = vld [vmem:[%s1765_s5 + $0x20] sm:$0xff]   ;;  %v1358_v30 = vld [vmem:[%s1765_s5 + $0x28] sm:$0xff]  }
 0x42f   : > { %1218 = vmatpush3.bf16.msra.mxu0 %v411_v32  ;;  %v515_v20 = vmul.f32 %v1376_v35, %v1366_v13 }
 0x430   : > { %v403_v34 = vpack.c.bf16 %v402_v31, %v402_v31  ;;  %1229 = vmatprep.subr.bf16.mxu0 %v1449_v4 }
 0x431   : > { %v516_v37 = vpack.c.bf16 %v515_v20, %v515_v20  ;;  %v742_v43 = vpop.permute.xlu0 %741 }
 0x432   : > { %1220 = vmatmul.mubr.msk.bf16.vlgmr.msra.gmra.mrb[8].mxu0 %vm343_vm4, %v403_v34  ;;  %v747_v45 = vsel %vm409_vm6, %v742_v43, 0  ;;  %v1360_v43 = vld [vmem:[%s1765_s5 + $0x38] sm:$0xff]  }
 0x433   : > { %1230 = vmatpush3.bf16.msra.mxu0 %v523_v36  ;;  %1231 = vmatprep.mubr.msk.bf16.mxu0 %vm1450_vm1, %v1449_v4 }
 0x434   : > { %1241 = vmatprep.subr.bf16.mxu0 %v1449_v4  ;;  %v1378_v38 = vpop.eup %1377 }
 0x435   : > { %v627_v40 = vmul.f32 %v1378_v38, %v1370_v18 }
 0x437   : > { %v628_v44 = vpack.c.bf16 %v627_v40, %v627_v40 }
 0x43a   : > { %1232 = vmatmul.mubr.msk.bf16.vlgmr.msra.gmra.mrb[12].mxu0 %vm343_vm4, %v516_v37 }
 0x43b   : > { %1243 = vmatprep.mubr.msk.bf16.mxu0 %vm1450_vm1, %v1449_v4 }
 0x456   : > { %v737_v39 = vpop.xlane.xlu1 %736 }
 0x457   : > { %1379 = vrcp.f32 %v737_v39 }
 0x45a   : > { %v630_v41 = vpop.permute.xlu1 %629 }
 0x45b   : > { %v635_v42 = vsel %vm409_vm6, %v630_v41, 0 }
 0x45c   : > { %1242 = vmatpush3.bf16.msra.mxu0 %v635_v42  ;;  %v1359_v42 = vld [vmem:[%s1765_s5 + $0x30] sm:$0xff]  }
 0x45d   : > { %1253 = vmatprep.subr.bf16.mxu0 %v1449_v4 }
 0x45f   : > { %1244 = vmatmul.mubr.msk.bf16.vlgmr.msra.gmra.mrb[16].mxu0 %vm343_vm4, %v628_v44 }
 0x460   : > { %1254 = vmatpush3.bf16.msra.mxu0 %v747_v45  ;;  %1255 = vmatprep.mubr.msk.bf16.mxu0 %vm1450_vm1, %v1449_v4 }
 0x461   : > { %v1380_v46 = vpop.eup %1379  ;;  %911 = vmatprep.subr.bf16.mxu0 %v1349_v22 }
 0x462   : > { %v739_v47 = vmul.f32 %v1380_v46, %v1372_v24  ;;  %v1350_v24 = vld [vmem:[%s1764_s4 + $0x10] ss:$8 sps:$4 sm:$0xff]  }
 0x464   : > { %v740_v48 = vpack.c.bf16 %v739_v47, %v739_v47 }
 0x467   : > { %1256 = vmatmul.mubr.msk.bf16.vlgmr.msra.gmra.mrb[20].mxu0 %vm343_vm4, %v740_v48 }
 0x468   : > { %943 = vmatprep.mubr.bf16.mxu0 %v1465_v23  ;;  %912 = vmatpush1.bf16.msra.mxu0 %v1347_v21 }
 0x505   : > { %v447_v49 = vpop.f32.mrb[8].mxu0 }
 0x506   : > { %v1221_v50 = vpop.f32.mrb[9].mxu0 }
 0x507   : > { %v450_v51 = vpop.f32.mrb[10].mxu0 }
 0x508   : > { %v1222_v52 = vpop.f32.mrb[11].mxu0 }
 0x50d   : > { %v559_v53 = vpop.f32.mrb[12].mxu0 }
 0x50e   : > { %790 = vrot.lane.b32.xlu1 %v559_v53, %s1462_s16  ;;  %v1233_v54 = vpop.f32.mrb[13].mxu0 }
 0x50f   : > { %v562_v55 = vpop.f32.mrb[14].mxu0 }
 0x510   : > { %v1234_v56 = vpop.f32.mrb[15].mxu0 }
 0x532   : > { %v671_v59 = vpop.f32.mrb[16].mxu0 }
 0x533   : > { %794 = vrot.lane.b32.xlu0 %v671_v59, %s1463_s26  ;;  %v1245_v60 = vpop.f32.mrb[17].mxu0  ;;  %s1075_s26 = sshll.u32 %s242_s20, 4  ;;  %s1719_s26 = int_to_ptr.vmem [resolvable:$true] %s1075_s26 }
 0x534   : > { %v674_v61 = vpop.f32.mrb[18].mxu0  ;;  %s1385_s10 = scalar_lea.vmem %s1719_s26, 128  ;;  %p1392_p0 = scmp.lt.s32.totalorder %s1719_s26, %s1390_s12 }
 0x535   : > { %v1246_v62 = vpop.f32.mrb[19].mxu0  ;;  %p1386_p11 = scmp.ne.s32.totalorder %s1719_s26, %s1385_s10  ;;  %p1393_p1 = scmp.lt.s32.totalorder %s1391_s13, %s1385_s10 }
 0x537   : > { %p1387_p12 = pnand %p1386_p11, %p1540_p5  ;;  %p1394_p2 = por %p1393_p1, %p1392_p0 }
 0x539   : > { %p1388_p13 = pneg %p1387_p12 }
 0x53a   : > { %v783_v63 = vpop.f32.mrb[20].mxu0 }
 0x53b   : > { %798 = vrot.lane.b32.xlu1 %v783_v63, %s1464_s28  ;;  %v1257_v1 = vpop.f32.mrb[21].mxu0  ;;  %p1395_p3 = pnand %p1394_p2, %p1388_p13 }
 0x53c   : > { %v786_v2 = vpop.f32.mrb[22].mxu0 }
 0x53d   : > { %v1258_v3 = vpop.f32.mrb[23].mxu0 }
 0x580   : > { %v791_v5 = vpop.permute.xlu1 %790 }
 0x581   : > { %v801_v7 = vsel %vm343_vm4, %v447_v49, %v791_v5 }
 0x5a5   : > { %v795_v6 = vpop.permute.xlu0 %794 }
 0x5a6   : > { %v803_v8 = vsel %vm802_vm7, %v801_v7, %v795_v6 }
 0x5ad   : > { %v799_v9 = vpop.permute.xlu1 %798 }
 0x5ae   : > { %v805_v10 = vsel %vm804_vm8, %v803_v8, %v799_v9 }
 0x5af   : > { %v806_v11 = vpack.c.bf16 %v805_v10, %v805_v10 }
 0x5b1   : > { %1264 = vmatmul.mubr.msk.bf16.vlgmr.msra.gmra.mrb[12].mxu1 %vm251_vm0, %v806_v11 }
 0x5b2   : > { %1283 = vmatprep.mubr.msk.bf16.mxu1 %vm1450_vm1, %v1449_v4  ;;  %1268 = vmatpush3.bf16.msra.mxu1 %v1353_v25 }
 0x5b3   : > { %1269 = vmatprep.subr.bf16.mxu1 %v1449_v4 }
 0x5b6   : > { %1270 = vmatpush3.bf16.msra.mxu1 %v1354_v26 }
 0x5b7   : > { %1271 = vmatprep.subr.bf16.mxu1 %v1449_v4 }
 0x5ba   : > { %1272 = vmatpush3.bf16.msra.mxu1 %v1355_v27 }
 0x5bb   : > { %1273 = vmatprep.subr.bf16.mxu1 %v1449_v4 }
 0x5be   : > { %1274 = vmatpush3.bf16.msra.mxu1 %v1356_v28 }
 0x5bf   : > { %1275 = vmatprep.subr.bf16.mxu1 %v1449_v4 }
 0x5c2   : > { %1276 = vmatpush3.bf16.msra.mxu1 %v1357_v29 }
 0x5c3   : > { %1277 = vmatprep.subr.bf16.mxu1 %v1449_v4 }
 0x5c6   : > { %1278 = vmatpush3.bf16.msra.mxu1 %v1358_v30 }
 0x5c7   : > { %1279 = vmatprep.subr.bf16.mxu1 %v1449_v4 }
 0x5ca   : > { %1280 = vmatpush3.bf16.msra.mxu1 %v1359_v42 }
 0x5cb   : > { %1281 = vmatprep.subr.bf16.mxu1 %v1449_v4 }
 0x5ce   : > { %1282 = vmatpush3.bf16.msra.mxu1 %v1360_v43 }
 0x684   : > { %v860_v12 = vpop.f32.mrb[12].mxu1 }
 0x685   : > { %v1660_v13 = vadd.f32 %v860_v12, %v1555_v0  ;;  %v1265_v15 = vpop.f32.mrb[13].mxu1  ;;  %v1352_v0 = vld [vmem:[%s1764_s4 + $0x14] ss:$8 sps:$4 sm:$0xff]  }
 0x686   : > { %v863_v16 = vpop.f32.mrb[14].mxu1  ;;  %913 = vmatprep.subr.bf16.mxu0 %v1352_v0 }
 0x687   : > { %v1266_v17 = vpop.f32.mrb[15].mxu1  ;;  %v867_v18 = vmul.f32 %v1660_v13, %v1660_v13  ;;  %914 = vmatpush1.bf16.msra.mxu0 %v1350_v24  ;;  %v872_v38 = vmul.f32 %v1577_v14, %v1660_v13 }
 0x689   : > { %v868_v19 = vsel %vm251_vm0, %v867_v18, 0.0 }
 0x68a   : > { %869 = vadd.xlane.f32.xlu0 %v868_v19 }
 0x717   : > { %v870_v31 = vpop.xlane.xlu0 %869 }
 0x718   : > { %v871_v32 = vmul.f32 0.03125, %v870_v31 }
 0x71a   : > { %1381 = vrsqrt.f32 %v871_v32  ;;  %vm875_vm9 = vcmp.eq.f32.partialorder %v871_v32, inf  ;;  %v878_v35 = vand.u32 2147483648, %v871_v32  ;;  %vm877_vm10 = vcmp.eq.f32.partialorder %v871_v32, 0.0 }
 0x724   : > { %v1382_v33 = vpop.eup %1381 }
 0x725   : > { %v874_v34 = vmul.f32 %v1382_v33, %v871_v32 }
 0x727   : > { %v876_v36 = vsel %vm875_vm9, %v871_v32, %v874_v34 }
 0x728   : > { %v879_v20 = vsel %vm877_vm10, %v878_v35, %v876_v36 }
 0x729   : > { %v880_v37 = vadd.f32 1e-06, %v879_v20 }
 0x72b   : > { %1383 = vrcp.f32 %v880_v37 }
 0x735   : > { %v1384_v39 = vpop.eup %1383 }
 0x736   : > { %v882_v40 = vmul.f32 %v1384_v39, %v872_v38 }
 0x738   : > { %v883_v41 = vpack.c.bf16 %v882_v40, %v882_v40 }
 0x73a   : > { %1159 = vmatmul.mubr.msk.bf16.vlgmr.msra.gmra.mrb[24].mxu0 %vm251_vm0, %v883_v41 }
 0x80d   : > { %v945_v14 = vpop.f32.mrb[24].mxu0 }
 0x80e   : > { %v952_v44 = vmax.f32 %v945_v14, 0.0  ;;  %v947_v45 = vpop.f32.mrb[25].mxu0 }
 0x80f   : > { %v949_v46 = vpop.f32.mrb[26].mxu0 }
 0x810   : > { %v953_v47 = vmul.f32 %v952_v44, %v947_v45  ;;  %v950_v48 = vpop.f32.mrb[27].mxu0 }
 0x812   : > { %v954_v49 = vpack.c.bf16 %v953_v47, %v953_v47 }
 0x814   : > { %1284 = vmatmul.mubr.bf16.vlgmr.msra.gmra.mrb[16].mxu1 %v954_v49 }
 0x8e7   : > { %v1053_v4 = vpop.f32.mrb[16].mxu1 }
 0x8e8   : > { %v1059_v50 = vadd.f32 %v1053_v4, %v1660_v13  ;;  %v1285_v51 = vpop.f32.mrb[17].mxu1 }
 0x8e9   : > { %v1056_v52 = vpop.f32.mrb[18].mxu1 }
 0x8ea   : > { %v1286_v53 = vpop.f32.mrb[19].mxu1  ;;  %1060 = vst.msk [vmem:[%s242_s20] sm:$0xff] %vm251_vm0, %v1059_v50 }
 0x8eb   : > { %1398 = shalt.err (!%p1395_p3)
}
 0x8ec   : > { %s1399_s14 = scalar_lea.hbm %s1717_s9, 128  ;;  %s1403_s17 = scalar_lea.hbm %s1766_s6, 256 }
 0x8ed   : > { %p1400_p4 = scmp.ne.s32.totalorder %s1717_s9, %s1399_s14  ;;  %p1404_p9 = scmp.lt.u32.totalorder %s1717_s9, %s1766_s6 }
 0x8ee   : > { %p1405_p10 = scmp.lt.u32.totalorder %s1403_s17, %s1399_s14  ;;  %p1407_p12 = scmp.lt.u32.totalorder %s1399_s14, %s1717_s9 }
 0x8ef   : > { %p1401_p7 = pnand %p1400_p4, %p1540_p5 }
 0x8f0   : > { %p1406_p11 = por %p1405_p10, %p1404_p9 }
 0x8f1   : > { %p1402_p8 = pneg %p1401_p7 }
 0x8f2   : > { %p1408_p13 = por %p1407_p12, %p1406_p11 }
 0x8f4   : > { %p1409_p0 = pnand %p1408_p13, %p1402_p8 }
 0x8f6   : > { %1412 = shalt.err (!%p1409_p0)
}
 0x8f7   : > { %1287 = dma.vmem_to_hbm [thread:$0]  (%p1540_p5), %s1719_s26, 128, %s1717_s9, %s1062_s25  }
 0x8f8 PF: > { %p1293_p1 = scmp.ge.s32.totalorder %s1447_s24, 2  ;;  %s1087_s20 = sand.u32 1, %s1435_s21  }
 0x8f9   : > { %s1088_s28 = scalar_lea.sflag [#allocation3], %s1087_s20 }
 0x8fa   : > { %p1290_p2 = pnand %p1293_p1, %p1544_p6 }
 0x8fc   : > { %1430 = dma.done.wait (!%p1290_p2), %s1088_s28, 128  }
 0x8fd   : > { %1432 = vsyncadd (!%p1290_p2), %s1088_s28, 4294967168  ;;  %p16_p3 = scmp.ge.s32.totalorder %s1527_s27, 4   ;;  %s1769_s21 = smov %s1439_s22 }
 0x8fe   : > { %s1770_s22 = smov %s1443_s23  ;;  %s1771_s23 = smov %s1538_s30 }
 0x8ff   : > { %s1772_s24 = smov %s1527_s27  ;;  %18 = sbr.rel (!%p16_p3) target bundleno = 3 (0x3), region = 79 }
 0x906   :  { %1093 = vsyncpa [#allocation3], 1 }
 0x907   :  { %1095 = vsyncpa [#allocation3 + $0x1], 1 }

</bundles_post_ra>
